<compile_context>
chip_gen: v5e
topology: v5e:2x2
jax: 0.10.0
libtpu: 0.0.40
codegen_flags: <defaults>
</compile_context>

<pallas_src>
import functools

import jax
import jax.numpy as jnp
from jax import lax
from jax.experimental import pallas as pl
from jax.experimental.pallas import tpu as pltpu


# dot_general dimension numbers: contract the minor dim of both operands (A @ B^T).
_NT = (((1,), (1,)), ((), ()))


def _cdiv(a, b):
    return -(-a // b)


# ----------------------------------------------------------------------------
# Kernels
# ----------------------------------------------------------------------------
def _gcn_kernel_state_lanes(x_ref, w1p_ref, b1_ref, w2_ref, o_ref, *, compute_dtype):
    """GloRe case (N < 128 <= S): keep the state dim on MXU lanes.

    x_ref:   (TB, S, N)  activation tile (natural layout)
    w1p_ref: (N, N)      conv1 weight with the residual folded in: W1 + I
    b1_ref:  (N, 1)      conv1 bias, float32
    w2_ref:  (S, S)      conv2 weight (out_state, in_state)
    o_ref:   (TB, S, N)

    Both matmuls are NT-form (contract minor dims), so no transpose/relayout
    of x or h is ever needed:
      conv1+res : (N,N) x (S,N)^T -> (N,S)   output lanes = S >= 128 (dense)
      conv2     : (S,S) x (N,S)^T -> (S,N)   lands directly in the store layout
    """
    tb = x_ref.shape[0]
    w1p = w1p_ref[...]
    b1 = b1_ref[...]
    w2 = w2_ref[...]

    def body(b, carry):
        xb = x_ref[b].astype(compute_dtype)                                    # (S, N)
        g = lax.dot_general(w1p, xb, _NT, preferred_element_type=jnp.float32)  # (N, S)
        h = jnp.maximum(g + b1, 0.0).astype(compute_dtype)                     # bias+ReLU in f32
        yb = lax.dot_general(w2, h, _NT, preferred_element_type=jnp.float32)   # (S, N)
        o_ref[b] = yb.astype(o_ref.dtype)
        return carry

    lax.fori_loop(0, tb, body, 0, unroll=bool(tb <= 8))


def _gcn_kernel_node_lanes(x_ref, w1pt_ref, b1_ref, w2_ref, o_ref, *,
                           compute_dtype, fold_conv1):
    """Node dim on lanes (used when N >= 128, or for small/unaligned shapes).

    x_ref:    (TB, S, N)
    w1pt_ref: (N, N)   (W1 + I)^T  -> (in_node, out_node)
    b1_ref:   (1, N)   float32
    w2_ref:   (S, S)   (out_state, in_state)
    o_ref:    (TB, S, N)
    """
    tb, s, n = x_ref.shape
    w1pt = w1pt_ref[...]
    b1 = b1_ref[...]
    w2 = w2_ref[...]

    if fold_conv1:
        # conv1 (+ folded residual) as ONE GEMM over the folded (TB*S, N) slab.
        # The reshape is layout-free only when S % 8 == 0 (guarded by wrapper).
        x2 = x_ref[...].astype(compute_dtype).reshape(tb * s, n)
        g = jnp.dot(x2, w1pt, preferred_element_type=jnp.float32)              # (TB*S, N)
        h = jnp.maximum(g + b1, 0.0)                                            # bias+ReLU in f32
        # Stage h in the output block (no dedicated VMEM scratch needed); it is
        # overwritten batch-by-batch below, before the writeback DMA runs.
        o_ref[...] = h.astype(o_ref.dtype).reshape(tb, s, n)

        def conv2(b, carry):
            hb = o_ref[b].astype(compute_dtype)                                 # (S, N)
            yb = jnp.dot(w2, hb, preferred_element_type=jnp.float32)            # (S, N)
            o_ref[b] = yb.astype(o_ref.dtype)
            return carry

        lax.fori_loop(0, tb, conv2, 0, unroll=bool(tb <= 8))
    else:
        # S % 8 != 0: folding would force a relayout copy, so stay per-batch.
        def body(b, carry):
            xb = x_ref[b].astype(compute_dtype)                                 # (S, N)
            g = jnp.dot(xb, w1pt, preferred_element_type=jnp.float32)
            h = jnp.maximum(g + b1, 0.0).astype(compute_dtype)
            yb = jnp.dot(w2, h, preferred_element_type=jnp.float32)
            o_ref[b] = yb.astype(o_ref.dtype)
            return carry

        lax.fori_loop(0, tb, body, 0, unroll=bool(tb <= 8))


# ----------------------------------------------------------------------------
# Wrapper
# ----------------------------------------------------------------------------
def _vmem_capacity_bytes():
    """Physical VMEM of the local TPU; conservative (v7x, 64 MiB) if unknown."""
    cap = 64 * 1024 * 1024
    try:
        info = pltpu.get_tpu_info()
        cap = int(getattr(info, "vmem_capacity_bytes", cap) or cap)
    except Exception:
        pass
    return cap


def _pick_batch_tile(batch, per_batch_bytes, act_budget_bytes, *,
                     max_tile=16, prefer_even_steps=False):
    """Batch-tile (TB) choice under a VMEM budget."""
    max_tb = max(1, min(act_budget_bytes // max(per_batch_bytes, 1), max_tile, batch))
    # Largest divisor of `batch` within the cap -> no ragged last block.
    tb = max(d for d in range(1, max_tb + 1) if batch % d == 0)
    # Non-divisor batches (e.g. prime B > max_tb) collapse to tb == 1 above;
    # a cdiv grid with one ragged (masked) last block beats `batch` tiny steps.
    if _cdiv(batch, max_tb) < _cdiv(batch, tb):
        tb = max_tb
    # v7x shards the "parallel" grid axis over 2 TensorCores: keep the step
    # count even when possible so neither core idles.  Gated off on 1-TC parts
    # (v5e / v6e) where the extra step is pure per-step overhead.
    if prefer_even_steps:
        steps = _cdiv(batch, tb)
        if steps % 2 == 1:
            cand = _cdiv(batch, steps + 1)
            if _cdiv(batch, cand) % 2 == 0:
                tb = cand
    return tb


def gcn_forward(x, w1, b1, w2, *, max_batch_tile=16):
    """GloRe GCN forward.  x: (B, S, N); w1: (N, N); b1: (N,); w2: (S, S)."""
    B, S, N = x.shape

    # Compute dtype: follow the input (bf16 inputs -> bf16 MXU); accumulation
    # is always f32 and bias/ReLU are applied in f32.
    cdt = x.dtype
    if cdt not in (jnp.dtype(jnp.float32), jnp.dtype(jnp.bfloat16)):
        cdt = jnp.dtype(jnp.float32)

    # Fold the residual into conv1's weight: h + x == x @ (W1 + I)^T + b1.
    # (For bf16 operands the diagonal 1 + w rounds in bf16, a ~0.2% deviation
    # on the residual path -- within the accepted bf16 error budget.)
    w1p = w1.astype(jnp.float32) + jnp.eye(N, dtype=jnp.float32)
    w1p_c = w1p.astype(cdt)
    w2_c = w2.astype(cdt)
    b1_f32 = b1.astype(jnp.float32)

    # Generation-aware VMEM budgeting.
    vmem_cap = _vmem_capacity_bytes()
    vmem_limit = int(min(vmem_cap * 3 // 4, 96 * 1024 * 1024))   # 96 MiB v5e/v6e, 48 MiB v7x
    prefer_even_steps = vmem_cap < 100 * 1024 * 1024             # 64-MiB parts ~ v7x (2 TCs)

    itemsize = x.dtype.itemsize
    cbytes = jnp.dtype(cdt).itemsize
    # Per batch element: double-buffered input + output tiles at real dtypes,
    # one f32 conv1 accumulator and one compute-dtype h intermediate.
    per_batch_bytes = S * N * (2 * itemsize + 2 * itemsize + 4 + cbytes)
    fixed_bytes = 2 * (N * N + S * S) * cbytes + 8 * N + (2 << 20)   # weights/bias (dbl-buf) + slack
    act_budget = max(vmem_limit - fixed_bytes, per_batch_bytes)

    TB = _pick_batch_tile(B, per_batch_bytes, act_budget,
                          max_tile=max_batch_tile,
                          prefer_even_steps=prefer_even_steps)
    steps = _cdiv(B, TB)

    # Lane-density driven path choice (review item: any S >= 128 with N < 128
    # uses the state-on-lanes path; N >= 128 is already lane-dense as-is).
    use_state_lanes = (S >= 128) and (N < 128)
    if use_state_lanes:
        kernel = functools.partial(_gcn_kernel_state_lanes, compute_dtype=cdt)
        w1_arg = w1p_c                       # (N_out, N_in)
        b1_arg = b1_f32.reshape(N, 1)
    else:
        kernel = functools.partial(_gcn_kernel_node_lanes, compute_dtype=cdt,
                                   fold_conv1=(S % 8 == 0))
        w1_arg = jnp.transpose(w1p_c)        # (N_in, N_out)
        b1_arg = b1_f32.reshape(1, N)

    return pl.pallas_call(
        kernel,
        out_shape=jax.ShapeDtypeStruct((B, S, N), x.dtype),
        grid_spec=pltpu.PrefetchScalarGridSpec(
            num_scalar_prefetch=0,
            grid=(steps,),
            in_specs=[
                pl.BlockSpec((TB, S, N), lambda g: (g, 0, 0)),     # activation tile
                pl.BlockSpec(w1_arg.shape, lambda g: (0, 0)),      # W1 + I (layout per path)
                pl.BlockSpec(b1_arg.shape, lambda g: (0, 0)),      # b1 (f32)
                pl.BlockSpec((S, S), lambda g: (0, 0)),            # W2
            ],
            out_specs=pl.BlockSpec((TB, S, N), lambda g: (g, 0, 0)),
        ),
        compiler_params=pltpu.CompilerParams(
            dimension_semantics=("parallel",),
            vmem_limit_bytes=vmem_limit,
        ),
    )(x, w1_arg, b1_arg, w2_c)


# ----------------------------------------------------------------------------
# Reference & test
# ----------------------------------------------------------------------------
def gcn_reference(x, w1, b1, w2):
    """Pure-JAX f32 reference mirroring the PyTorch forward."""
    x = x.astype(jnp.float32)
    w1 = w1.astype(jnp.float32)
    b1 = b1.astype(jnp.float32)
    w2 = w2.astype(jnp.float32)
    h = jnp.einsum('bsj,nj->bsn', x, w1,
                   precision=jax.lax.Precision.HIGHEST) + b1[None, None, :]
    h = jnp.maximum(h + x, 0.0)
    return jnp.einsum('st,btn->bsn', w2, h, precision=jax.lax.Precision.HIGHEST)


if __name__ == "__main__":
    def run_case(key, B, S, N, dtype, atol, rtol, **kwargs):
        kx, kw1, kb1, kw2 = jax.random.split(key, 4)
        x = jax.random.normal(kx, (B, S, N), dtype=jnp.float32).astype(dtype)
        w1 = (jax.random.normal(kw1, (N, N), dtype=jnp.float32) * 0.1).astype(dtype)
        b1 = (jax.random.normal(kb1, (N,), dtype=jnp.float32) * 0.1).astype(dtype)
        w2 = (jax.random.normal(kw2, (S, S), dtype=jnp.float32) * 0.1).astype(dtype)
        out = jax.block_until_ready(gcn_forward(x, w1, b1, w2, **kwargs))
        ref = gcn_reference(x, w1, b1, w2)
        assert out.shape == ref.shape and out.dtype == x.dtype
        ok = jnp.allclose(out.astype(jnp.float32), ref, atol=atol, rtol=rtol)
        err = jnp.max(jnp.abs(out.astype(jnp.float32) - ref))
        assert ok, f"mismatch B={B} S={S} N={N} dtype={dtype} max_abs_err={err}"

    key = jax.random.PRNGKey(0)
    k1, k2, k3, k4 = jax.random.split(key, 4)

    # 1) Small module-consistent shapes -> node-on-lanes path, folded conv1 GEMM.
    run_case(k1, B=2, S=32, N=16, dtype=jnp.float32, atol=1e-2, rtol=1e-2)
    # 2) GloRe-like shapes -> lane-dense state-on-lanes path.
    run_case(k2, B=4, S=128, N=64, dtype=jnp.float32, atol=1e-2, rtol=1e-2)
    # 3) Non-divisor batch -> cdiv grid with a ragged (masked) last block.
    run_case(k3, B=7, S=32, N=16, dtype=jnp.float32, atol=1e-2, rtol=1e-2,
             max_batch_tile=4)
    # 4) bf16 operands -> bf16 MXU path with f32 accumulation.
    run_case(k4, B=2, S=128, N=64, dtype=jnp.bfloat16, atol=1e-1, rtol=1e-1)

    print("KERNEL_OK")
</pallas_src>

<mosaic_0001>
module attributes {stable_mosaic.version = 11 : i64} {
  func.func @_gcn_kernel_node_lanes(%arg0: i32, %arg1: memref<1x32x16xf32, #tpu.memory_space<vmem>>, %arg2: memref<16x16xf32, #tpu.memory_space<vmem>>, %arg3: memref<1x16xf32, #tpu.memory_space<vmem>>, %arg4: memref<32x32xf32, #tpu.memory_space<vmem>>, %arg5: memref<1x32x16xf32, #tpu.memory_space<vmem>>) attributes {dimension_semantics = [#tpu.dimension_semantics<parallel>], iteration_bounds = array<i64: 2>, scalar_prefetch = 0 : i64, scratch_operands = 0 : i64, tpu.core_type = #tpu.core_type<tc>, window_params = [{transform_indices = @transform_0, window_bounds = array<i64: 1, 32, 16>}, {pipeline_mode = #tpu.pipeline_mode<synchronous>, transform_indices = @transform_1, window_bounds = array<i64: 16, 16>}, {pipeline_mode = #tpu.pipeline_mode<synchronous>, transform_indices = @transform_2, window_bounds = array<i64: 1, 16>}, {pipeline_mode = #tpu.pipeline_mode<synchronous>, transform_indices = @transform_3, window_bounds = array<i64: 32, 32>}, {transform_indices = @transform_4, window_bounds = array<i64: 1, 32, 16>}]} {
    %c0 = arith.constant 0 : index
    %c0_0 = arith.constant 0 : index
    %0 = vector.load %arg2[%c0, %c0_0] : memref<16x16xf32, #tpu.memory_space<vmem>>, vector<16x16xf32>
    %c0_1 = arith.constant 0 : index
    %c0_2 = arith.constant 0 : index
    %1 = vector.load %arg3[%c0_1, %c0_2] : memref<1x16xf32, #tpu.memory_space<vmem>>, vector<1x16xf32>
    %c0_3 = arith.constant 0 : index
    %c0_4 = arith.constant 0 : index
    %2 = vector.load %arg4[%c0_3, %c0_4] : memref<32x32xf32, #tpu.memory_space<vmem>>, vector<32x32xf32>
    %c0_5 = arith.constant 0 : index
    %c0_6 = arith.constant 0 : index
    %c0_7 = arith.constant 0 : index
    %3 = vector.load %arg1[%c0_5, %c0_6, %c0_7] : memref<1x32x16xf32, #tpu.memory_space<vmem>>, vector<1x32x16xf32>
    %4 = vector.shape_cast %3 : vector<1x32x16xf32> to vector<32x16xf32>
    %cst = arith.constant dense<0.000000e+00> : vector<32x16xf32>
    %5 = tpu.matmul %4, %0, %cst {dimension_numbers = #tpu.dot_dimension_numbers<[1], [0], [0], [1], [0, 0, 1, 1], [], []>} : vector<32x16xf32>, vector<16x16xf32>, vector<32x16xf32> -> vector<32x16xf32>
    %6 = vector.broadcast %1 : vector<1x16xf32> to vector<32x16xf32>
    %7 = arith.addf %5, %6 : vector<32x16xf32>
    %cst_8 = arith.constant 0.000000e+00 : f32
    %8 = vector.broadcast %cst_8 : f32 to vector<32x16xf32>
    %9 = arith.maximumf %7, %8 : vector<32x16xf32>
    %10 = vector.shape_cast %9 : vector<32x16xf32> to vector<1x32x16xf32>
    %c0_9 = arith.constant 0 : index
    %c0_10 = arith.constant 0 : index
    %c0_11 = arith.constant 0 : index
    %11 = vector.load %arg5[%c0_9, %c0_10, %c0_11] : memref<1x32x16xf32, #tpu.memory_space<vmem>>, vector<1x32x16xf32>
    tpu.vector_store %arg5[%c0_9, %c0_10, %c0_11], %10 {strides = array<i32>} : memref<1x32x16xf32, #tpu.memory_space<vmem>>, vector<1x32x16xf32>,
    %c0_i32 = arith.constant 0 : i32
    %12 = arith.index_cast %c0_i32 : i32 to index
    %c0_12 = arith.constant 0 : index
    %c0_13 = arith.constant 0 : index
    %13 = vector.load %arg5[%12, %c0_12, %c0_13] : memref<1x32x16xf32, #tpu.memory_space<vmem>>, vector<1x32x16xf32>
    %14 = vector.shape_cast %13 : vector<1x32x16xf32> to vector<32x16xf32>
    %cst_14 = arith.constant dense<0.000000e+00> : vector<32x16xf32>
    %15 = tpu.matmul %2, %14, %cst_14 {dimension_numbers = #tpu.dot_dimension_numbers<[1], [0], [0], [1], [0, 0, 1, 1], [], []>} : vector<32x32xf32>, vector<32x16xf32>, vector<32x16xf32> -> vector<32x16xf32>
    %16 = arith.index_cast %c0_i32 : i32 to index
    %c0_15 = arith.constant 0 : index
    %c0_16 = arith.constant 0 : index
    %17 = vector.load %arg5[%16, %c0_15, %c0_16] : memref<1x32x16xf32, #tpu.memory_space<vmem>>, vector<1x32x16xf32>
    %18 = vector.shape_cast %17 : vector<1x32x16xf32> to vector<32x16xf32>
    %19 = vector.shape_cast %15 : vector<32x16xf32> to vector<1x32x16xf32>
    tpu.vector_store %arg5[%16, %c0_15, %c0_16], %19 {strides = array<i32>} : memref<1x32x16xf32, #tpu.memory_space<vmem>>, vector<1x32x16xf32>,
    %c1_i32 = arith.constant 1 : i32
    return
  }
  func.func @transform_0(%arg0: i32) -> (i32, i32, i32) {
    %c0_i32 = arith.constant 0 : i32
    %c0_i32_0 = arith.constant 0 : i32
    %c0_i32_1 = arith.constant 0 : i32
    return %arg0, %c0_i32, %c0_i32_0 : i32, i32, i32
  }
  func.func @transform_1(%arg0: i32) -> (i32, i32) {
    %c0_i32 = arith.constant 0 : i32
    %c0_i32_0 = arith.constant 0 : i32
    %c0_i32_1 = arith.constant 0 : i32
    return %c0_i32, %c0_i32_0 : i32, i32
  }
  func.func @transform_2(%arg0: i32) -> (i32, i32) {
    %c0_i32 = arith.constant 0 : i32
    %c0_i32_0 = arith.constant 0 : i32
    %c0_i32_1 = arith.constant 0 : i32
    return %c0_i32, %c0_i32_0 : i32, i32
  }
  func.func @transform_3(%arg0: i32) -> (i32, i32) {
    %c0_i32 = arith.constant 0 : i32
    %c0_i32_0 = arith.constant 0 : i32
    %c0_i32_1 = arith.constant 0 : i32
    return %c0_i32, %c0_i32_0 : i32, i32
  }
  func.func @transform_4(%arg0: i32) -> (i32, i32, i32) {
    %c0_i32 = arith.constant 0 : i32
    %c0_i32_0 = arith.constant 0 : i32
    %c0_i32_1 = arith.constant 0 : i32
    return %arg0, %c0_i32, %c0_i32_0 : i32, i32, i32
  }
}

</mosaic_0001>

<bundles_post_ra>
// kernel: tpu_custom_call.1
= control target key start
LH: loop header
LB: loop body
LE: loop exit
PB: predicated region body
PF: predicated region fallthrough
CT: control target
= control target key end

     0   :  { %s436_s15 = smov 0   ;;  %s500_s0 = inlined_call_operand.vmem [shape: f32[2,32,16], index: 0, kind: input, shape index: {}]   ;;  %s501_s1 = inlined_call_operand.vmem [shape: f32[16,16], index: 1, kind: input, shape index: {}]   ;;  %s502_s2 = inlined_call_operand.vmem [shape: f32[1,16], index: 2, kind: input, shape index: {}]   ;;  %s503_s3 = inlined_call_operand.vmem [shape: f32[32,32], index: 3, kind: input, shape index: {}]   ;;  %s504_s4 = inlined_call_operand.vmem [shape: f32[2,32,16], index: 4, kind: output, shape index: {}]  }
   0x1 LB: > { %s367_s16 = sadd.s32 4294967295, %s409_s15   ;;  %p371_p0 = scmp.ge.s32.totalorder %s409_s15, 1  ;;  %s409_s15 = sphi %s436_s15, %s14_s15  }
   0x2   : > { %p162_p1 = scmp.lt.s32.totalorder %s409_s15, 3 }
   0x4   : > { %p163_p2 = pnand %p371_p0, %p162_p1 }
   0x5   : > { %p188_p3 = scmp.lt.s32.totalorder (!%p163_p2), %s367_s16, 1 }
   0x6   : > { %166 = sbr.rel (%p163_p2) target bundleno = 323 (0x143), region = 36 }
   0xb   : > { %v199_v0 = vld [vmem:[%s501_s1 + $0x8] sm:$0xff]  ;;  %v198_v1 = vld [vmem:[%s501_s1] sm:$0xff]  ;;  %s506_s16 = smov (!%p188_p3, %s367_s16), 1  ;;  %vm212_vm0 = vcmask 130048   ;;  %v203_v23 = vld [vmem:[%s503_s3 + $0x10] sm:$0xff]  ;;  %vm266_vm1 = vcmask 261120  }
   0xc   : > { %388 = vmatpush.msra.mxu3 %v199_v0  ;;  %239 = vmatpush.msra.mxu0 %v199_v0  ;;  %s386_s21 = sshll.u32 %s506_s16, 5  ;;  %v402_v6 = vld [vmem:[%s502_s2] ss:$0 sm:$0xff]  ;;  %v204_v25 = vld [vmem:[%s503_s3 + $0x18] sm:$0xff]  ;;  %v202_v26 = vld [vmem:[%s503_s3 + $0x8] sm:$0xff] }
   0xd   : > { %s192_s24 = scalar_lea.vmem %s500_s0, %s386_s21  ;;  %s463_s29 = scalar_lea.vmem %s504_s4, %s386_s21  ;;  %v201_v24 = vld [vmem:[%s503_s3] sm:$0xff] }
   0xe   : > { %389 = vmatpush.msra.mxu3 %v198_v1  ;;  %240 = vmatpush.msra.mxu0 %v198_v1  ;;  %v206_v2 = vld [vmem:[%s192_s24 + $0x8] sm:$0xff]  ;;  %v205_v3 = vld [vmem:[%s192_s24] sm:$0xff]  ;;  %v207_v4 = vld [vmem:[%s192_s24 + $0x10] sm:$0xff] }
   0xf   : > { %377 = vmatmul.msk.f32.vlgmr.msra.gmra.mxu3 %vm212_vm0, %v206_v2  ;;  %376 = vmatmul.msk.f32.vlgmr.msra.gmra.mxu0 %vm212_vm0, %v205_v3  ;;  %v208_v5 = vld [vmem:[%s192_s24 + $0x18] sm:$0xff] }
  0x17   : > { %378 = vmatmul.msk.f32.gmra.mxu3 %vm212_vm0, %v207_v4 }
  0x1f   : > { %379 = vmatmul.msk.f32.gmra.mxu3 %vm212_vm0, %v208_v5 }
  0x8c   : > { %v242_v7 = vpop.f32.mrf.mxu0 }
  0x8d   : > { %v243_v8 = vadd.f32 %v402_v6, %v242_v7 }
  0x8f   : > { %v254_v9 = vmax.f32 %v243_v8, 0.0 }
  0x91   : > { %258 = vst.msk [vmem:[%s463_s29] sm:$0xff] %vm212_vm0, %v254_v9 }
  0x92   : > { %v245_v10 = vpop.f32.mrf.mxu3 }
  0x93   : > { %v246_v11 = vadd.f32 %v402_v6, %v245_v10 }
  0x95   : > { %v255_v12 = vmax.f32 %v246_v11, 0.0 }
  0x97   : > { %259 = vst.msk [vmem:[%s463_s29 + $0x8] sm:$0xff] %vm212_vm0, %v255_v12 }
  0x98   : > { %v262_v22 = vld [vmem:[%s463_s29] sm:$0xff] }
  0x9a   : > { %v248_v13 = vpop.f32.mrf.mxu3 }
  0x9b   : > { %v249_v14 = vadd.f32 %v402_v6, %v248_v13 }
  0x9d   : > { %v256_v15 = vmax.f32 %v249_v14, 0.0 }
  0x9e   : > { %v263_v21 = vld [vmem:[%s463_s29 + $0x8] sm:$0xff] }
  0x9f   : > { %260 = vst.msk [vmem:[%s463_s29 + $0x10] sm:$0xff] %vm212_vm0, %v256_v15 }
  0xa2   : > { %v251_v16 = vpop.f32.mrf.mxu3 }
  0xa3   : > { %v252_v17 = vadd.f32 %v402_v6, %v251_v16 }
  0xa5   : > { %v257_v18 = vmax.f32 %v252_v17, 0.0 }
  0xa6   : > { %v264_v20 = vld [vmem:[%s463_s29 + $0x10] sm:$0xff] }
  0xa7   : > { %261 = vst.msk [vmem:[%s463_s29 + $0x18] sm:$0xff] %vm212_vm0, %v257_v18 }
  0xae   : > { %v265_v19 = vld [vmem:[%s463_s29 + $0x18] sm:$0xff] }
  0xaf   : > { %291 = vmatpush.msra.mxu1 %v265_v19  ;;  %390 = vmatpush.msra.mxu2 %v265_v19 }
  0xb1   : > { %292 = vmatpush.msra.mxu1 %v264_v20  ;;  %391 = vmatpush.msra.mxu2 %v264_v20 }
  0xb3   : > { %293 = vmatpush.msra.mxu1 %v263_v21  ;;  %392 = vmatpush.msra.mxu2 %v263_v21 }
  0xb5   : > { %294 = vmatpush.msra.mxu1 %v262_v22  ;;  %393 = vmatpush.msra.mxu2 %v262_v22 }
  0xb6   : > { %382 = vmatmul.msk.f32.vlgmr.msra.gmra.mxu2 %vm266_vm1, %v203_v23  ;;  %380 = vmatmul.msk.f32.vlgmr.msra.gmra.mxu1 %vm266_vm1, %v201_v24 }
  0xbe   : > { %383 = vmatmul.msk.f32.gmra.mxu2 %vm266_vm1, %v204_v25  ;;  %381 = vmatmul.msk.f32.gmra.mxu1 %vm266_vm1, %v202_v26 }
 0x133   : > { %v296_v27 = vpop.f32.mrf.mxu1 }
 0x134   : > { %308 = vst.msk [vmem:[%s463_s29] sm:$0xff] %vm212_vm0, %v296_v27 }
 0x139   : > { %v302_v28 = vpop.f32.mrf.mxu2 }
 0x13a   : > { %310 = vst.msk [vmem:[%s463_s29 + $0x10] sm:$0xff] %vm212_vm0, %v302_v28 }
 0x13b   : > { %v299_v29 = vpop.f32.mrf.mxu1 }
 0x13c   : > { %309 = vst.msk [vmem:[%s463_s29 + $0x8] sm:$0xff] %vm212_vm0, %v299_v29 }
 0x141   : > { %v305_v30 = vpop.f32.mrf.mxu2 }
 0x142   : > { %311 = vst.msk [vmem:[%s463_s29 + $0x18] sm:$0xff] %vm212_vm0, %v305_v30 }
 0x143 PF: > { %s14_s15 = sadd.s32 1, %s409_s15  }
 0x144   : > { %p11_p4 = scmp.ge.s32.totalorder %s14_s15, 4  }
 0x146   :  { %13 = sbr.rel (!%p11_p4) target bundleno = 1 (0x1), region = 66 }

</bundles_post_ra>
